<compile_context>
chip_gen: v5e
topology: v5e:2x2
jax: 0.10.0
libtpu: 0.0.40
codegen_flags: <defaults>
</compile_context>

<pallas_src>
import jax
import jax.numpy as jnp
import numpy as np
from jax.experimental import pallas as pl
from jax.experimental.pallas import tpu as pltpu

HIDDEN = 40          # hidden_dim in the PyTorch module
TOTAL_PTS = 50       # module's np.linspace(-5, 5, 50)
N_PAD = 128          # pad batch to one full vreg lane width


def mlp_kernel(x_ref, a_ref, b_ref, w3_ref, b3_ref, o_ref):
    # Lane-dense layout (batch on lanes):
    #   x:  (1, N)   A:  (H, 1)   B:  (H, 1)   w3: (H, 1)   b3: (1, 1)   o: (1, N)
    x = x_ref[...]                                               # (1, N)

    # Folded Linear(1->H) . Linear(H->H): pre-activation = x * A + B  (VPU FMA)
    h = jnp.maximum(x * a_ref[...] + b_ref[...], 0.0)            # (H, N), ReLU

    # Linear(H->1): elementwise mul + sublane reduce (no MXU, output stays lane-dense)
    y = jnp.sum(h * w3_ref[...], axis=0, keepdims=True) + b3_ref[...]   # (1, N)
    o_ref[...] = y.astype(o_ref.dtype)


def fold_params(params):
    """Fold first Linear(1,H) into the hidden Linear(H,H) (no nonlinearity between)."""
    w1, b1, w2, b2, w3, b3 = params
    a = (w1 @ w2).reshape(HIDDEN, 1)           # (H, 1)
    b = (b1 @ w2 + b2).reshape(HIDDEN, 1)      # (H, 1)
    return a, b, w3.reshape(HIDDEN, 1), b3.reshape(1, 1)


def mlp_forward(x_col, folded):
    """x_col: (n, 1) column of sample points. Returns (n, 1) like the module."""
    a, b, w3, b3 = folded
    n = x_col.shape[0]
    n_pad = max(N_PAD, ((n + 127) // 128) * 128)

    # Lane-dense slab: batch on the last (lane) dim, zero-padded to n_pad lanes.
    x_row = jnp.zeros((1, n_pad), jnp.float32).at[0, :n].set(x_col[:, 0])

    vmem = pl.BlockSpec(memory_space=pltpu.MemorySpace.VMEM)
    y_row = pl.pallas_call(
        mlp_kernel,
        out_shape=jax.ShapeDtypeStruct((1, n_pad), jnp.float32),
        in_specs=[vmem, vmem, vmem, vmem, vmem],
        out_specs=vmem,
    )(x_row, a, b, w3, b3)

    return y_row[0, :n].reshape(n, 1)


def init_params(key):
    """Deterministic init matching torch.nn.Linear shapes (stored transposed)."""
    ks = jax.random.split(key, 6)

    def uni(k, shape, fan_in):
        bound = 1.0 / np.sqrt(fan_in)
        return jax.random.uniform(k, shape, jnp.float32, -bound, bound)

    w1 = uni(ks[0], (1, HIDDEN), 1)            # first.weight.T   (1, 40)
    b1 = uni(ks[1], (1, HIDDEN), 1)            # first.bias
    w2 = uni(ks[2], (HIDDEN, HIDDEN), HIDDEN)  # hidden.0.linear.weight.T (40, 40)
    b2 = uni(ks[3], (1, HIDDEN), HIDDEN)       # hidden.0.linear.bias
    w3 = uni(ks[4], (HIDDEN, 1), HIDDEN)       # last.weight.T    (40, 1)
    b3 = uni(ks[5], (1, 1), HIDDEN)            # last.bias
    return (w1, b1, w2, b2, w3, b3)


def reference(x_col, params):
    """Unfused pure-JAX reference that mirrors the PyTorch module exactly."""
    w1, b1, w2, b2, w3, b3 = params
    h = x_col @ w1 + b1
    h = jnp.maximum(h @ w2 + b2, 0.0)
    return h @ w3 + b3


if __name__ == "__main__":
    key = jax.random.PRNGKey(0)
    k_params, _ = jax.random.split(key)
    params = init_params(k_params)
    folded = fold_params(params)

    # Exact sample grid of the module: 50 points on [-5, 5] as a (50, 1) column.
    x = jnp.asarray(np.linspace(-5.0, 5.0, TOTAL_PTS), jnp.float32).reshape(TOTAL_PTS, 1)

    out = mlp_forward(x, folded)
    jax.block_until_ready(out)

    ref = reference(x, params)
    # rtol relaxed slightly: the host-side layer fold changes f32 summation order.
    np.testing.assert_allclose(np.asarray(out), np.asarray(ref), rtol=1e-4, atol=1e-5)

    print("KERNEL_OK")
</pallas_src>

<mosaic_0001>
module attributes {stable_mosaic.version = 11 : i64} {
  func.func @mlp_kernel(%arg0: memref<1x128xf32, #tpu.memory_space<vmem>>, %arg1: memref<40x1xf32, #tpu.memory_space<vmem>>, %arg2: memref<40x1xf32, #tpu.memory_space<vmem>>, %arg3: memref<40x1xf32, #tpu.memory_space<vmem>>, %arg4: memref<1x1xf32, #tpu.memory_space<vmem>>, %arg5: memref<1x128xf32, #tpu.memory_space<vmem>>) attributes {dimension_semantics = [], scalar_prefetch = 0 : i64, scratch_operands = 0 : i64, tpu.core_type = #tpu.core_type<tc>} {
    %c0 = arith.constant 0 : index
    %c0_0 = arith.constant 0 : index
    %0 = vector.load %arg0[%c0, %c0_0] : memref<1x128xf32, #tpu.memory_space<vmem>>, vector<1x128xf32>
    %c0_1 = arith.constant 0 : index
    %c0_2 = arith.constant 0 : index
    %1 = vector.load %arg1[%c0_1, %c0_2] : memref<40x1xf32, #tpu.memory_space<vmem>>, vector<40x1xf32>
    %2 = vector.broadcast %0 : vector<1x128xf32> to vector<40x128xf32>
    %3 = vector.broadcast %1 : vector<40x1xf32> to vector<40x128xf32>
    %4 = arith.mulf %2, %3 : vector<40x128xf32>
    %c0_3 = arith.constant 0 : index
    %c0_4 = arith.constant 0 : index
    %5 = vector.load %arg2[%c0_3, %c0_4] : memref<40x1xf32, #tpu.memory_space<vmem>>, vector<40x1xf32>
    %6 = vector.broadcast %5 : vector<40x1xf32> to vector<40x128xf32>
    %7 = arith.addf %4, %6 : vector<40x128xf32>
    %cst = arith.constant 0.000000e+00 : f32
    %8 = vector.broadcast %cst : f32 to vector<40x128xf32>
    %9 = arith.maximumf %7, %8 : vector<40x128xf32>
    %c0_5 = arith.constant 0 : index
    %c0_6 = arith.constant 0 : index
    %10 = vector.load %arg3[%c0_5, %c0_6] : memref<40x1xf32, #tpu.memory_space<vmem>>, vector<40x1xf32>
    %11 = vector.broadcast %10 : vector<40x1xf32> to vector<40x128xf32>
    %12 = arith.mulf %9, %11 : vector<40x128xf32>
    %cst_7 = arith.constant dense<0.000000e+00> : vector<128xf32>
    %13 = vector.multi_reduction <add>, %12, %cst_7 [0] : vector<40x128xf32> to vector<128xf32>
    %14 = vector.shape_cast %13 : vector<128xf32> to vector<1x128xf32>
    %c0_8 = arith.constant 0 : index
    %c0_9 = arith.constant 0 : index
    %15 = vector.load %arg4[%c0_8, %c0_9] : memref<1x1xf32, #tpu.memory_space<vmem>>, vector<1x1xf32>
    %16 = vector.broadcast %15 : vector<1x1xf32> to vector<1x128xf32>
    %17 = arith.addf %14, %16 : vector<1x128xf32>
    %c0_10 = arith.constant 0 : index
    %c0_11 = arith.constant 0 : index
    %18 = vector.load %arg5[%c0_10, %c0_11] : memref<1x128xf32, #tpu.memory_space<vmem>>, vector<1x128xf32>
    tpu.vector_store %arg5[%c0_10, %c0_11], %17 {strides = array<i32>} : memref<1x128xf32, #tpu.memory_space<vmem>>, vector<1x128xf32>,
    return
  }
}

</mosaic_0001>

<bundles_post_ra>
// kernel: tpu_custom_call.1
= control target key start
LH: loop header
LB: loop body
LE: loop exit
PB: predicated region body
PF: predicated region fallthrough
CT: control target
= control target key end

     0   :  { %s290_s0 = inlined_call_operand.vmem [shape: f32[1,128], index: 0, kind: input, shape index: {}]   ;;  %s291_s1 = inlined_call_operand.vmem [shape: f32[40,1], index: 1, kind: input, shape index: {}]   ;;  %s292_s2 = inlined_call_operand.vmem [shape: f32[40,1], index: 2, kind: input, shape index: {}]   ;;  %s293_s3 = inlined_call_operand.vmem [shape: f32[40,1], index: 3, kind: input, shape index: {}]   ;;  %s294_s4 = inlined_call_operand.<no memory space> [shape: f32[1,1], index: 4, kind: input, shape index: {}]   ;;  %s295_s5 = inlined_call_operand.hbm [shape: f32[1,128], index: 5, kind: output, shape index: {}]  }
   0x1   :  { %v10_v0 = vstv %s294_s4 }
   0x2   :  { %11 = vst [vmem:[#allocation2] sm:$0x1] %v10_v0 }
   0x3   :  { %v28_v1 = vld [vmem:[%s291_s1 + $0x20] sm:$0xff]  ;;  %v26_v2 = vld [vmem:[%s291_s1 + $0x10] sm:$0xff]  ;;  %v204_v4 = vmov 0  }
   0x4   :  { %v24_v3 = vld [vmem:[%s291_s1] sm:$0xff]  ;;  %176 = vset.pattern.permute.xlu2 %v204_v4  ;;  %175 = vset.pattern.permute.xlu1 %v204_v4 }
   0x5   :  { %174 = vset.pattern.permute.xlu0 %v204_v4  ;;  %54 = vperm.xlu2 %176, %v28_v1  }
   0x6   :  { %44 = vperm.xlu1 %175, %v26_v2   ;;  %34 = vperm.xlu0 %174, %v24_v3  }
   0x7   :  { %12 = vsyncpa [#allocation4], 0  ;;  %v62_v5 = vld [vmem:[%s292_s2] sm:$0xff]  ;;  %v27_v6 = vld [vmem:[%s291_s1 + $0x18] sm:$0xff]  ;;  %s163_s4 = sshll.u32 %s295_s5, 4  ;;  %s164_s4 = int_to_ptr.hbm [resolvable:$true] %s163_s4 }
   0x8   :  { %v25_v7 = vld [vmem:[%s291_s1 + $0x8] sm:$0xff]  ;;  %v65_v8 = vld [vmem:[%s292_s2 + $0x18] sm:$0xff]  ;;  %v64_v9 = vld [vmem:[%s292_s2 + $0x10] sm:$0xff] }
   0x9   :  { %v63_v10 = vld [vmem:[%s292_s2 + $0x8] sm:$0xff]  ;;  %v66_v11 = vld [vmem:[%s292_s2 + $0x20] sm:$0xff]  ;;  %v105_v15 = vld [vmem:[%s293_s3 + $0x18] sm:$0xff] }
   0xa   :  { %v103_v12 = vld [vmem:[%s293_s3 + $0x8] sm:$0xff]  ;;  %v102_v13 = vld [vmem:[%s293_s3] sm:$0xff]  ;;  %v104_v16 = vld [vmem:[%s293_s3 + $0x10] sm:$0xff] }
   0xb   :  { %v106_v14 = vld [vmem:[%s293_s3 + $0x20] sm:$0xff] }
   0xc   :  { %v147_v17 = vld [vmem:[#allocation2] sm:$0x1] }
   0xd   :  { %69 = vperm.xlu2 %176, %v62_v5   ;;  %v177_v25 = vld [vmem:[%s290_s0] ss:$0 sm:$0xff]  ;;  %s205_s0 = smov [#allocation3]  }
   0xe   :  { %49 = vperm.xlu1 %175, %v27_v6   ;;  %39 = vperm.xlu0 %174, %v25_v7   ;;  %s161_s3 = sshll.u32 %s205_s0, 4  ;;  %s162_s3 = int_to_ptr.vmem [resolvable:$true] %s161_s3 }
  0x15   :  { %84 = vperm.xlu2 %176, %v65_v8  }
  0x16   :  { %79 = vperm.xlu1 %175, %v64_v9   ;;  %74 = vperm.xlu0 %174, %v63_v10  }
  0x1d   :  { %89 = vperm.xlu2 %176, %v66_v11  }
  0x1e   :  { %114 = vperm.xlu1 %175, %v103_v12   ;;  %109 = vperm.xlu0 %174, %v102_v13  }
  0x25   :  { %129 = vperm.xlu2 %176, %v106_v14  }
  0x26   :  { %124 = vperm.xlu1 %175, %v105_v15   ;;  %119 = vperm.xlu0 %174, %v104_v16  }
  0x2e   :  { %150 = vperm.xlu0 %174, %v147_v17  }
  0x5f   :  { %v55_v18 = vpop.permute.xlu2 %54 }
  0x60   :  { %v61_v35 = vmul.f32 %v177_v25, %v55_v18 }
  0x67   :  { %v70_v21 = vpop.permute.xlu2 %69 }
  0x6f   :  { %v85_v24 = vpop.permute.xlu2 %84 }
  0x77   :  { %v90_v30 = vpop.permute.xlu2 %89 }
  0x78   :  { %v45_v19 = vpop.permute.xlu1 %44  ;;  %v35_v20 = vpop.permute.xlu0 %34  ;;  %v96_v41 = vadd.f32 %v90_v30, %v61_v35 }
  0x79   :  { %v57_v28 = vmul.f32 %v177_v25, %v35_v20  ;;  %v59_v36 = vmul.f32 %v177_v25, %v45_v19 }
  0x7a   :  { %v101_v48 = vmax.f32 %v96_v41, 0.0 }
  0x7b   :  { %v92_v31 = vadd.f32 %v70_v21, %v57_v28 }
  0x7d   :  { %v97_v40 = vmax.f32 %v92_v31, 0.0 }
  0x7f   :  { %v130_v52 = vpop.permute.xlu2 %129 }
  0x80   :  { %v50_v22 = vpop.permute.xlu1 %49  ;;  %v40_v23 = vpop.permute.xlu0 %39  ;;  %v136_v55 = vmul.f32 %v130_v52, %v101_v48 }
  0x81   :  { %v58_v29 = vmul.f32 %v177_v25, %v40_v23  ;;  %v60_v37 = vmul.f32 %v177_v25, %v50_v22 }
  0x83   :  { %v95_v42 = vadd.f32 %v85_v24, %v60_v37 }
  0x85   :  { %v100_v50 = vmax.f32 %v95_v42, 0.0 }
  0x88   :  { %v80_v26 = vpop.permute.xlu1 %79  ;;  %v75_v27 = vpop.permute.xlu0 %74 }
  0x89   :  { %v93_v32 = vadd.f32 %v75_v27, %v58_v29  ;;  %v94_v38 = vadd.f32 %v80_v26, %v59_v36 }
  0x8b   :  { %v98_v39 = vmax.f32 %v93_v32, 0.0  ;;  %v99_v45 = vmax.f32 %v94_v38, 0.0 }
  0x90   :  { %v115_v33 = vpop.permute.xlu1 %114  ;;  %v110_v34 = vpop.permute.xlu0 %109 }
  0x91   :  { %v133_v43 = vmul.f32 %v115_v33, %v98_v39  ;;  %v132_v44 = vmul.f32 %v110_v34, %v97_v40 }
  0x93   :  { %v137_v49 = vadd.f32 %v133_v43, %v132_v44 }
  0x98   :  { %v125_v46 = vpop.permute.xlu1 %124  ;;  %v120_v47 = vpop.permute.xlu0 %119 }
  0x99   :  { %v134_v51 = vmul.f32 %v120_v47, %v99_v45  ;;  %v135_v53 = vmul.f32 %v125_v46, %v100_v50 }
  0x9b   :  { %v138_v54 = vadd.f32 %v137_v49, %v134_v51 }
  0x9d   :  { %v139_v56 = vadd.f32 %v138_v54, %v135_v53 }
  0x9f   :  { %v140_v57 = vadd.f32 %v139_v56, %v136_v55 }
  0xa0   :  { %v151_v62 = vpop.permute.xlu0 %150 }
  0xa1   :  { %v141_v58 = vrot.slane %v140_v57, 4  ;;  %v153_v1 = vperm.slane %v151_v62, 0 }
  0xa3   :  { %v142_v59 = vadd.f32 %v141_v58, %v140_v57 }
  0xa5   :  { %v143_v60 = vrot.slane %v142_v59, 2 }
  0xa7   :  { %v144_v61 = vadd.f32 %v143_v60, %v142_v59 }
  0xa9   :  { %v145_v63 = vrot.slane %v144_v61, 1 }
  0xab   :  { %v146_v0 = vadd.f32 %v145_v63, %v144_v61 }
  0xad   :  { %v154_v2 = vadd.f32 %v153_v1, %v146_v0 }
  0xaf   :  { %155 = vst [vmem:[#allocation3] sm:$0x1] %v154_v2 }
  0xb0   :  { %166 = dma.vmem_to_hbm [thread:$0]  %s162_s3, 16, %s164_s4, [#allocation4]  }
  0xb1   :  { %202 = dma.done.wait [#allocation4], 16  }
  0xb2   :  { %203 = vsyncadd [#allocation4], 4294967280 }
  0xb3   :  { %171 = vsyncpa [#allocation4], 1 }

</bundles_post_ra>
